<compile_context>
chip_gen: v5e
topology: v5e:2x2
jax: 0.10.0
libtpu: 0.0.40
codegen_flags: <defaults>
</compile_context>

<pallas_src>
import functools

import jax
import jax.numpy as jnp
from jax.experimental import pallas as pl
from jax.experimental.pallas import tpu as pltpu


def _round_up(a: int, m: int) -> int:
    return ((a + m - 1) // m) * m


def _cdiv(a: int, m: int) -> int:
    return (a + m - 1) // m


def actor_critic_kernel(x_ref, w1_ref, b1_ref, wpv_ref, bpv_ref,
                        logp_ref, v_ref, *, action_space: int):
    # ---- head: Linear(obs, 64) + Tanh (f32 accumulation, f32 tanh) ----
    h = jnp.tanh(
        jnp.dot(x_ref[...], w1_ref[...], preferred_element_type=jnp.float32)
        + b1_ref[...]
    )
    # pol / val both apply another Tanh to the head output (module semantics).
    h2 = jnp.tanh(h)

    # ---- fused policy + value head: one MXU pass over the packed (64, 128) ----
    y = (
        jnp.dot(h2.astype(wpv_ref.dtype), wpv_ref[...],
                preferred_element_type=jnp.float32)
        + bpv_ref[...]
    )  # (TILE_B, OUT_PAD): lanes [0,A)=logits, lane A=value, rest zero-weights

    lane = jax.lax.broadcasted_iota(jnp.int32, y.shape, 1)
    is_logit = lane < action_space

    # Numerically stable log_softmax restricted to the valid logit lanes.
    masked_logits = jnp.where(is_logit, y, jnp.float32(-jnp.inf))
    m = jnp.max(masked_logits, axis=-1, keepdims=True)
    shifted = masked_logits - m
    lse = jnp.log(jnp.sum(jnp.exp(shifted), axis=-1, keepdims=True))
    log_p = shifted - lse

    # Narrow outputs: only the A logit lanes and the single value lane hit HBM.
    logp_ref[...] = log_p[:, :action_space]
    v_ref[...] = y[:, action_space:action_space + 1]


def actor_critic_forward(x, params, *, use_bf16_matmul: bool = True,
                         tile_b: int = 256):
    """Returns (log_p (B, A), v (B, 1)) matching the PyTorch module."""
    w1, b1, wp, bp, wv, bv = params
    B, obs = x.shape
    H = w1.shape[1]
    A = wp.shape[1]
    OUT_PAD = max(128, _round_up(A + 1, 128))

    # Fuse + lane-pad the policy/value heads once in the wrapper.
    wpv = jnp.zeros((H, OUT_PAD), jnp.float32)
    wpv = wpv.at[:, :A].set(wp).at[:, A:A + 1].set(wv)
    bpv = jnp.zeros((1, OUT_PAD), jnp.float32)
    bpv = bpv.at[:, :A].set(bp).at[:, A:A + 1].set(bv)

    # bf16 MXU operands (v5e MXU is bf16-only; halves x/W DMA everywhere).
    # Accumulation and all activations stay f32 inside the kernel.
    mm_dtype = jnp.bfloat16 if use_bf16_matmul else jnp.float32
    x_mm = x.astype(mm_dtype)
    w1_mm = w1.astype(mm_dtype)
    wpv_mm = wpv.astype(mm_dtype)

    # Batch tiling: derive TILE_B from the batch so padding waste is <= 7 rows
    # per tile; ensure >= 2 grid steps for large batches (v7x megacore).
    n_steps = max(1, _cdiv(B, tile_b))
    if n_steps == 1 and B >= 2 * 256:
        n_steps = 2
    TILE_B = _round_up(_cdiv(B, n_steps), 8)
    B_pad = n_steps * TILE_B
    if B_pad != B:
        x_mm = jnp.pad(x_mm, ((0, B_pad - B), (0, 0)))
    grid = (n_steps,)

    kernel = functools.partial(actor_critic_kernel, action_space=A)

    log_p_pad, v_pad = pl.pallas_call(
        kernel,
        out_shape=(
            jax.ShapeDtypeStruct((B_pad, A), jnp.float32),
            jax.ShapeDtypeStruct((B_pad, 1), jnp.float32),
        ),
        grid=grid,
        in_specs=[
            pl.BlockSpec((TILE_B, obs), lambda i: (i, 0)),   # x: tiled/pipelined
            pl.BlockSpec((obs, H), lambda i: (0, 0)),        # W1: resident
            pl.BlockSpec((1, H), lambda i: (0, 0)),          # b1: resident
            pl.BlockSpec((H, OUT_PAD), lambda i: (0, 0)),    # fused Wpv: resident
            pl.BlockSpec((1, OUT_PAD), lambda i: (0, 0)),    # fused bpv: resident
        ],
        out_specs=(
            pl.BlockSpec((TILE_B, A), lambda i: (i, 0)),     # log_p: narrow DMA
            pl.BlockSpec((TILE_B, 1), lambda i: (i, 0)),     # v: narrow DMA
        ),
        compiler_params=pltpu.CompilerParams(
            dimension_semantics=("parallel",),
            # Actual footprint ~1-2 MiB (x/out tiles double-buffered + tiny
            # resident weights); 32 MiB leaves headroom and fits v7x's 64 MiB.
            vmem_limit_bytes=32 * 1024 * 1024,
        ),
    )(x_mm, w1_mm, b1, wpv_mm, bpv)

    if B_pad != B:
        return log_p_pad[:B], v_pad[:B]
    return log_p_pad, v_pad


def init_params(key, obs_space, action_space, h=64):
    """Deterministic init mimicking nn.Linear default (uniform +/- 1/sqrt(fan_in))."""
    ks = jax.random.split(key, 6)

    def lin(kw, kb, fan_in, fan_out):
        bound = 1.0 / jnp.sqrt(jnp.float32(fan_in))
        w = jax.random.uniform(kw, (fan_in, fan_out), jnp.float32, -bound, bound)
        b = jax.random.uniform(kb, (1, fan_out), jnp.float32, -bound, bound)
        return w, b

    w1, b1 = lin(ks[0], ks[1], obs_space, h)
    wp, bp = lin(ks[2], ks[3], h, action_space)
    wv, bv = lin(ks[4], ks[5], h, 1)
    return (w1, b1, wp, bp, wv, bv)


def reference_forward(x, params):
    w1, b1, wp, bp, wv, bv = params
    out = jnp.tanh(x @ w1 + b1)
    h2 = jnp.tanh(out)
    logits = h2 @ wp + bp
    log_p = jax.nn.log_softmax(logits, axis=-1)
    v = h2 @ wv + bv
    return log_p, v


if __name__ == "__main__":
    obs_space = 16
    action_space = 6
    batch = 8

    key = jax.random.PRNGKey(0)
    k_x, k_p = jax.random.split(key)
    x = jax.random.normal(k_x, (batch, obs_space), jnp.float32)
    params = init_params(k_p, obs_space, action_space)

    log_p_ref, v_ref = reference_forward(x, params)

    # Exact f32-operand path: matches the reference to f32 precision.
    log_p, v = jax.block_until_ready(
        actor_critic_forward(x, params, use_bf16_matmul=False))
    assert log_p.shape == (batch, action_space)
    assert v.shape == (batch, 1)
    assert jnp.allclose(log_p, log_p_ref, atol=1e-5, rtol=1e-5)
    assert jnp.allclose(v, v_ref, atol=1e-5, rtol=1e-5)

    # Default bf16-MXU fast path: f32 accumulation and f32 activations; only
    # operand rounding differs. Fine for PPO sampling; revalidate tolerances
    # before reusing for loss/gradient evaluation.
    log_p_bf, v_bf = jax.block_until_ready(actor_critic_forward(x, params))
    assert log_p_bf.shape == (batch, action_space)
    assert v_bf.shape == (batch, 1)
    assert jnp.allclose(log_p_bf, log_p_ref, atol=1e-1, rtol=1e-1)
    assert jnp.allclose(v_bf, v_ref, atol=1e-1, rtol=1e-1)

    print("KERNEL_OK")
</pallas_src>

<mosaic_0001>
module attributes {stable_mosaic.version = 11 : i64} {
  func.func @actor_critic_kernel(%arg0: i32, %arg1: memref<8x16xf32, #tpu.memory_space<vmem>>, %arg2: memref<16x64xf32, #tpu.memory_space<vmem>>, %arg3: memref<1x64xf32, #tpu.memory_space<vmem>>, %arg4: memref<64x128xf32, #tpu.memory_space<vmem>>, %arg5: memref<1x128xf32, #tpu.memory_space<vmem>>, %arg6: memref<8x6xf32, #tpu.memory_space<vmem>>, %arg7: memref<8x1xf32, #tpu.memory_space<vmem>>) attributes {dimension_semantics = [#tpu.dimension_semantics<parallel>], iteration_bounds = array<i64: 1>, scalar_prefetch = 0 : i64, scratch_operands = 0 : i64, tpu.core_type = #tpu.core_type<tc>, window_params = [{transform_indices = @transform_0, window_bounds = array<i64: 8, 16>}, {pipeline_mode = #tpu.pipeline_mode<synchronous>, transform_indices = @transform_1, window_bounds = array<i64: 16, 64>}, {pipeline_mode = #tpu.pipeline_mode<synchronous>, transform_indices = @transform_2, window_bounds = array<i64: 1, 64>}, {pipeline_mode = #tpu.pipeline_mode<synchronous>, transform_indices = @transform_3, window_bounds = array<i64: 64, 128>}, {pipeline_mode = #tpu.pipeline_mode<synchronous>, transform_indices = @transform_4, window_bounds = array<i64: 1, 128>}, {transform_indices = @transform_5, window_bounds = array<i64: 8, 6>}, {transform_indices = @transform_6, window_bounds = array<i64: 8, 1>}]} {
    %c0 = arith.constant 0 : index
    %c0_0 = arith.constant 0 : index
    %0 = vector.load %arg1[%c0, %c0_0] : memref<8x16xf32, #tpu.memory_space<vmem>>, vector<8x16xf32>
    %c0_1 = arith.constant 0 : index
    %c0_2 = arith.constant 0 : index
    %1 = vector.load %arg2[%c0_1, %c0_2] : memref<16x64xf32, #tpu.memory_space<vmem>>, vector<16x64xf32>
    %cst = arith.constant dense<0.000000e+00> : vector<8x64xf32>
    %2 = tpu.matmul %0, %1, %cst {dimension_numbers = #tpu.dot_dimension_numbers<[1], [0], [0], [1], [0, 0, 1, 1], [], []>} : vector<8x16xf32>, vector<16x64xf32>, vector<8x64xf32> -> vector<8x64xf32>
    %c0_3 = arith.constant 0 : index
    %c0_4 = arith.constant 0 : index
    %3 = vector.load %arg3[%c0_3, %c0_4] : memref<1x64xf32, #tpu.memory_space<vmem>>, vector<1x64xf32>
    %4 = vector.broadcast %3 : vector<1x64xf32> to vector<8x64xf32>
    %5 = arith.addf %2, %4 : vector<8x64xf32>
    %6 = math.tanh %5 : vector<8x64xf32>
    %7 = math.tanh %6 : vector<8x64xf32>
    %c0_5 = arith.constant 0 : index
    %c0_6 = arith.constant 0 : index
    %8 = vector.load %arg4[%c0_5, %c0_6] : memref<64x128xf32, #tpu.memory_space<vmem>>, vector<64x128xf32>
    %cst_7 = arith.constant dense<0.000000e+00> : vector<8x128xf32>
    %9 = tpu.matmul %7, %8, %cst_7 {dimension_numbers = #tpu.dot_dimension_numbers<[1], [0], [0], [1], [0, 0, 1, 1], [], []>} : vector<8x64xf32>, vector<64x128xf32>, vector<8x128xf32> -> vector<8x128xf32>
    %c0_8 = arith.constant 0 : index
    %c0_9 = arith.constant 0 : index
    %10 = vector.load %arg5[%c0_8, %c0_9] : memref<1x128xf32, #tpu.memory_space<vmem>>, vector<1x128xf32>
    %11 = vector.broadcast %10 : vector<1x128xf32> to vector<8x128xf32>
    %12 = arith.addf %9, %11 : vector<8x128xf32>
    %13 = tpu.iota {dimensions = array<i32: 1>} : vector<8x128xi32>
    %c6_i32 = arith.constant 6 : i32
    %14 = vector.broadcast %c6_i32 : i32 to vector<8x128xi32>
    %15 = arith.cmpi slt, %13, %14 : vector<8x128xi32>
    %cst_10 = arith.constant 0xFF800000 : f32
    %16 = vector.broadcast %cst_10 : f32 to vector<8x128xf32>
    %17 = arith.select %15, %12, %16 : vector<8x128xi1>, vector<8x128xf32>
    %cst_11 = arith.constant dense<0xFF800000> : vector<8xf32>
    %18 = vector.multi_reduction <maximumf>, %17, %cst_11 [1] : vector<8x128xf32> to vector<8xf32>
    %19 = vector.shape_cast %18 : vector<8xf32> to vector<8x1xf32>
    %20 = vector.broadcast %19 : vector<8x1xf32> to vector<8x128xf32>
    %21 = arith.subf %17, %20 : vector<8x128xf32>
    %22 = math.exp %21 : vector<8x128xf32>
    %cst_12 = arith.constant dense<0.000000e+00> : vector<8xf32>
    %23 = vector.multi_reduction <add>, %22, %cst_12 [1] : vector<8x128xf32> to vector<8xf32>
    %24 = vector.shape_cast %23 : vector<8xf32> to vector<8x1xf32>
    %25 = math.log %24 : vector<8x1xf32>
    %26 = vector.broadcast %25 : vector<8x1xf32> to vector<8x128xf32>
    %27 = arith.subf %21, %26 : vector<8x128xf32>
    %28 = vector.extract_strided_slice %27 {offsets = [0, 0], sizes = [8, 6], strides = [1, 1]} : vector<8x128xf32> to vector<8x6xf32>
    %c0_13 = arith.constant 0 : index
    %c0_14 = arith.constant 0 : index
    %29 = vector.load %arg6[%c0_13, %c0_14] : memref<8x6xf32, #tpu.memory_space<vmem>>, vector<8x6xf32>
    tpu.vector_store %arg6[%c0_13, %c0_14], %28 {strides = array<i32>} : memref<8x6xf32, #tpu.memory_space<vmem>>, vector<8x6xf32>,
    %30 = vector.extract_strided_slice %12 {offsets = [0, 6], sizes = [8, 1], strides = [1, 1]} : vector<8x128xf32> to vector<8x1xf32>
    %c0_15 = arith.constant 0 : index
    %c0_16 = arith.constant 0 : index
    %31 = vector.load %arg7[%c0_15, %c0_16] : memref<8x1xf32, #tpu.memory_space<vmem>>, vector<8x1xf32>
    tpu.vector_store %arg7[%c0_15, %c0_16], %30 {strides = array<i32>} : memref<8x1xf32, #tpu.memory_space<vmem>>, vector<8x1xf32>,
    return
  }
  func.func @transform_0(%arg0: i32) -> (i32, i32) {
    %c0_i32 = arith.constant 0 : i32
    %c0_i32_0 = arith.constant 0 : i32
    return %arg0, %c0_i32 : i32, i32
  }
  func.func @transform_1(%arg0: i32) -> (i32, i32) {
    %c0_i32 = arith.constant 0 : i32
    %c0_i32_0 = arith.constant 0 : i32
    %c0_i32_1 = arith.constant 0 : i32
    return %c0_i32, %c0_i32_0 : i32, i32
  }
  func.func @transform_2(%arg0: i32) -> (i32, i32) {
    %c0_i32 = arith.constant 0 : i32
    %c0_i32_0 = arith.constant 0 : i32
    %c0_i32_1 = arith.constant 0 : i32
    return %c0_i32, %c0_i32_0 : i32, i32
  }
  func.func @transform_3(%arg0: i32) -> (i32, i32) {
    %c0_i32 = arith.constant 0 : i32
    %c0_i32_0 = arith.constant 0 : i32
    %c0_i32_1 = arith.constant 0 : i32
    return %c0_i32, %c0_i32_0 : i32, i32
  }
  func.func @transform_4(%arg0: i32) -> (i32, i32) {
    %c0_i32 = arith.constant 0 : i32
    %c0_i32_0 = arith.constant 0 : i32
    %c0_i32_1 = arith.constant 0 : i32
    return %c0_i32, %c0_i32_0 : i32, i32
  }
  func.func @transform_5(%arg0: i32) -> (i32, i32) {
    %c0_i32 = arith.constant 0 : i32
    %c0_i32_0 = arith.constant 0 : i32
    return %arg0, %c0_i32 : i32, i32
  }
  func.func @transform_6(%arg0: i32) -> (i32, i32) {
    %c0_i32 = arith.constant 0 : i32
    %c0_i32_0 = arith.constant 0 : i32
    return %arg0, %c0_i32 : i32, i32
  }
}

</mosaic_0001>

<bundles_post_ra>
// kernel: tpu_custom_call.1
= control target key start
LH: loop header
LB: loop body
LE: loop exit
PB: predicated region body
PF: predicated region fallthrough
CT: control target
= control target key end

     0   :  { %12 = vsyncpa [#allocation3], 0  ;;  %s365_s0 = inlined_call_operand.hbm [shape: f32[8,16], index: 0, kind: input, shape index: {}]   ;;  %s366_s1 = inlined_call_operand.hbm [shape: f32[16,64], index: 1, kind: input, shape index: {}]   ;;  %s367_s2 = inlined_call_operand.vmem [shape: f32[1,64], index: 2, kind: input, shape index: {}]   ;;  %s368_s3 = inlined_call_operand.hbm [shape: f32[64,128], index: 3, kind: input, shape index: {}]   ;;  %s369_s4 = inlined_call_operand.vmem [shape: f32[1,128], index: 4, kind: input, shape index: {}]   ;;  %s370_s5 = inlined_call_operand.hbm [shape: f32[8,6], index: 5, kind: output, shape index: {0}]   ;;  %s371_s6 = inlined_call_operand.vmem [shape: f32[8,1], index: 6, kind: output, shape index: {1}]  }
   0x1   :  { %13 = vsyncpa [#allocation6], 0  ;;  %s30_s23 = sshll.u32 %s366_s1, 4  ;;  %s31_s23 = int_to_ptr.hbm [resolvable:$true] %s30_s23 }
   0x2   :  { %14 = vsyncpa [#allocation4], 0  ;;  %s302_s24 = smov [#allocation5]   ;;  %s20_s28 = sshll.u32 %s365_s0, 4  ;;  %s21_s28 = int_to_ptr.hbm [resolvable:$true] %s20_s28 }
   0x3   :  { %s32_s25 = sshll.u32 %s302_s24, 4  ;;  %s303_s29 = smov 128   ;;  %s33_s25 = int_to_ptr.vmem [resolvable:$true] %s32_s25 }
   0x4   :  { %s304_s30 = smov 8   ;;  %s305_s7 = smov [#allocation2]  }
   0x5   :  { %38 = dma.hbm_to_vmem [thread:$0]  %s31_s23, 256, %s33_s25, [#allocation6], %s303_s29, %s303_s29, %s304_s30  }
   0x6   :  { %s22_s8 = sshll.u32 %s305_s7, 4  ;;  %s45_s11 = sshll.u32 %s368_s3, 4  ;;  %s23_s8 = int_to_ptr.vmem [resolvable:$true] %s22_s8  ;;  %s46_s11 = int_to_ptr.hbm [resolvable:$true] %s45_s11 }
   0x7   :  { %25 = dma.hbm_to_vmem [thread:$0]  %s21_s28, 128, %s23_s8, [#allocation3]  }
   0x8   :  { %s306_s1 = smov [#allocation7]  }
   0x9   :  { %s47_s12 = sshll.u32 %s306_s1, 4  ;;  %s48_s12 = int_to_ptr.vmem [resolvable:$true] %s47_s12 }
   0xa   :  { %53 = dma.hbm_to_vmem [thread:$0]  %s46_s11, 1024, %s48_s12, [#allocation6], %s303_s29, %s303_s29, %s304_s30  }
   0xb   :  { %296 = dma.done.wait [#allocation3], 128  }
   0xc   :  { %297 = vsyncadd [#allocation3], 4294967168 }
   0xd   :  { %298 = dma.done.wait [#allocation6], 1280  }
   0xe   :  { %299 = vsyncadd [#allocation6], 4294966016  ;;  %v70_v0 = vld [vmem:[#allocation5 + $0x8] sm:$0xff]  ;;  %v69_v1 = vld [vmem:[#allocation5] sm:$0xff]  ;;  %vm75_vm0 = vcmask 130048   ;;  %vm113_vm1 = vcmask 523264   ;;  %v137_v16 = vlaneseq }
   0xf   :  { %93 = vmatpush.msra.mxu0 %v70_v0  ;;  %v68_v2 = vld [vmem:[#allocation2] sm:$0xff]  ;;  %v108_v3 = vld [vmem:[#allocation7 + $0x38] sm:$0xff]  ;;  %v107_v4 = vld [vmem:[#allocation7 + $0x30] sm:$0xff]  ;;  %s307_s15 = smov 122   ;;  %vm157_vm3 = vcmask 7168   ;;  %s166_s20 = sshll.u32 %s370_s5, 4  ;;  %s167_s20 = int_to_ptr.hbm [resolvable:$true] %s166_s20 }
  0x10   :  { %125 = vmatpush.msra.mxu1 %v108_v3  ;;  %v106_v5 = vld [vmem:[#allocation7 + $0x28] sm:$0xff]  ;;  %v105_v6 = vld [vmem:[#allocation7 + $0x20] sm:$0xff]  ;;  %v104_v7 = vld [vmem:[#allocation7 + $0x18] sm:$0xff]  ;;  %v138_v17 = vand.u32 127, %v137_v16  ;;  %vm151_vm4 = vcmask 48128  }
  0x11   :  { %94 = vmatpush.msra.mxu0 %v69_v1  ;;  %v103_v8 = vld [vmem:[#allocation7 + $0x10] sm:$0xff]  ;;  %v102_v9 = vld [vmem:[#allocation7 + $0x8] sm:$0xff]  ;;  %v101_v10 = vld [vmem:[#allocation7] sm:$0xff] }
  0x12   :  { %181 = vmatmul.msk.f32.vlgmr.msra.gmra.mxu0 %vm75_vm0, %v68_v2  ;;  %126 = vmatpush.msra.mxu1 %v107_v4  ;;  %v190_v11 = vld [vmem:[%s367_s2] ss:$0 sm:$0xff]  ;;  %vm139_vm2 = vcmp.lt.s32.totalorder %v138_v17, 6 }
  0x13   :  { %v191_v18 = vld [vmem:[%s369_s4] ss:$0 sm:$0xff]  ;;  %s308_s4 = smov [#allocation8]  }
  0x14   :  { %127 = vmatpush.msra.mxu1 %v106_v5  ;;  %s164_s17 = sshll.u32 %s308_s4, 4  ;;  %s165_s17 = int_to_ptr.vmem [resolvable:$true] %s164_s17 }
  0x16   :  { %128 = vmatpush.msra.mxu1 %v105_v6 }
  0x18   :  { %129 = vmatpush.msra.mxu1 %v104_v7 }
  0x1a   :  { %130 = vmatpush.msra.mxu1 %v103_v8 }
  0x1c   :  { %131 = vmatpush.msra.mxu1 %v102_v9 }
  0x1e   :  { %132 = vmatpush.msra.mxu1 %v101_v10 }
  0x8f   :  { %v96_v12 = vpop.f32.mrf.mxu0 }
  0x90   :  { %v97_v13 = vadd.f32 %v190_v11, %v96_v12 }
  0x92   :  { %192 = vtanh.f32 %v97_v13 }
  0x98   :  { %v193_v14 = vpop.eup %192 }
  0x99   :  { %194 = vtanh.f32 %v193_v14 }
  0x9f   :  { %v195_v15 = vpop.eup %194 }
  0xa0   :  { %182 = vmatmul.msk.f32.vlgmr.msra.gmra.mxu1 %vm113_vm1, %v195_v15 }
 0x11d   :  { %v134_v19 = vpop.f32.mrf.mxu1 }
 0x11e   :  { %v135_v20 = vadd.f32 %v191_v18, %v134_v19 }
 0x120   :  { %154 = vrot.lane.b32.xlu1 %v135_v20, %s307_s15  ;;  %v140_v21 = vsel %vm139_vm2, %v135_v20, -inf }
 0x121   :  { %141 = vmax.xlane.f32.xlu0 %v140_v21 }
 0x192   :  { %v155_v22 = vpop.permute.xlu1 %154 }
 0x193   :  { %158 = vst.msk [vmem:[%s371_s6] sm:$0xff] %vm157_vm3, %v155_v22 }
 0x194   :  { %v142_v23 = vpop.xlane.xlu0 %141 }
 0x195   :  { %v143_v24 = vsub.f32 %v140_v21, %v142_v23 }
 0x197   :  { %v144_v25 = vmul.f32 1.442695, %v143_v24 }
 0x199   :  { %196 = vpow2.f32 %v144_v25 }
 0x19f   :  { %v197_v26 = vpop.eup %196 }
 0x1a0   :  { %146 = vadd.xlane.f32.xlu0 %v197_v26 }
 0x213   :  { %v147_v27 = vpop.xlane.xlu0 %146 }
 0x214   :  { %198 = vlog2.f32 %v147_v27 }
 0x21a   :  { %v199_v28 = vpop.eup %198 }
 0x21b   :  { %v149_v29 = vmul.f32 0.6931472, %v199_v28 }
 0x21d   :  { %v150_v30 = vsub.f32 %v143_v24, %v149_v29 }
 0x21f   :  { %152 = vst.msk [vmem:[#allocation8] sm:$0xff] %vm151_vm4, %v150_v30 }
 0x220   :  { %169 = dma.vmem_to_hbm [thread:$0]  %s165_s17, 128, %s167_s20, [#allocation4]  }
 0x221   :  { %300 = dma.done.wait [#allocation4], 128  }
 0x222   :  { %301 = vsyncadd [#allocation4], 4294967168 }
 0x223   :  { %178 = vsyncpa [#allocation3], 1 }
 0x224   :  { %179 = vsyncpa [#allocation6], 1 }
 0x225   :  { %180 = vsyncpa [#allocation4], 1 }

</bundles_post_ra>
